<compile_context>
chip_gen: v7x
topology: tpu7x:2x2x1
jax: 0.10.0
libtpu: 0.0.40
codegen_flags: <defaults>
</compile_context>

<pallas_src>
import functools

import jax
import jax.numpy as jnp
from jax.experimental import pallas as pl
from jax.experimental.pallas import tpu as pltpu


def _class_std_kernel(x_ref, rm_ref, rv_ref, out_ref, sum_ref, sumsq_ref,
                      *, n_total, tn, mask_rows):
    k = pl.program_id(1)                                   # N (reduction) axis

    @pl.when(k == 0)
    def _():
        sum_ref[...] = jnp.zeros_like(sum_ref)
        sumsq_ref[...] = jnp.zeros_like(sumsq_ref)

    x = x_ref[...].astype(jnp.float32)                     # [tn, tf]
    if mask_rows:
        # Last N tile is ragged: rows past num_classes hold unspecified data.
        row = jax.lax.broadcasted_iota(jnp.int32, x.shape, 0) + k * tn
        x = jnp.where(row < n_total, x, 0.0)

    sum_ref[...] += jnp.sum(x, axis=0, keepdims=True)
    sumsq_ref[...] += jnp.sum(x * x, axis=0, keepdims=True)

    @pl.when(k == pl.num_programs(1) - 1)
    def _():
        mean = sum_ref[...] * (1.0 / n_total)              # [1, tf]
        # Unbiased variance (torch.var default /(N-1)), one-pass form.
        var = (sumsq_ref[...] - n_total * mean * mean) * (1.0 / (n_total - 1))
        new_rm = 0.9 * rm_ref[...].astype(jnp.float32) + 0.1 * mean
        new_rv = 0.9 * rv_ref[...].astype(jnp.float32) + 0.1 * var
        # Packed (8, tf) output block: rows 0..3 carry the stats.
        out_ref[0:1, :] = mean
        out_ref[1:2, :] = var
        out_ref[2:3, :] = new_rm
        out_ref[3:4, :] = new_rv
        out_ref[4:8, :] = jnp.zeros((4, mean.shape[-1]), jnp.float32)


def _pick_tiles(n, f, itemsize):
    """Pick (tn, tf): tf a multiple of 128, tn a multiple of 8, such that the
    double-buffered working set fits a VMEM budget safe on all generations."""
    budget = 12 * 1024 * 1024                 # < v5e's 16 MiB scoped default
    f_cap = ((f + 127) // 128) * 128
    n_cap = ((n + 7) // 8) * 8

    # Lane tile: largest multiple of 128, capped at 2048 and at F.  If a single
    # tile would cover all of F, split into >=2 F tiles (when F >= 256) so the
    # leading "parallel" axis can shard across v7x's two TensorCores.
    tf = min(2048, f_cap)
    if tf == f_cap and f_cap >= 256:
        tf = ((f_cap // 2 + 127) // 128) * 128

    # N tile: largest multiple of 8 whose double-buffered working set fits.
    # (x tile dominates; stat rows, packed output block and scratch are tiny.)
    overhead = (2 * 2 + 2 * 8 + 2) * tf * 4
    max_tn = (budget - overhead) // (2 * tf * itemsize)
    tn = max(8, min(n_cap, (max_tn // 8) * 8))
    return tn, tf


def class_standardization_fwd(class_feats, running_mean, running_var,
                              *, tile_n=None, tile_f=None):
    """
    class_feats : [num_classes, feat_dim]
    running_mean: [feat_dim]
    running_var : [feat_dim]

    Returns ((batch_mean, batch_var), new_running_mean, new_running_var), i.e.
    the PyTorch forward's return value plus the EMA buffer updates.  The
    standardized tensor of the PyTorch code is dead (never returned) and is
    not materialized.  tile_n / tile_f are optional overrides (testing).
    """
    n, f = class_feats.shape
    if n < 2:
        raise ValueError("num_classes must be >= 2 for unbiased variance (/(N-1)).")

    tn, tf = _pick_tiles(n, f, class_feats.dtype.itemsize)
    if tile_n is not None:
        tn = tile_n
    if tile_f is not None:
        tf = tile_f

    # Running stats as (1, F) rows (reshape is free; no padding, no copies).
    rm2 = running_mean.astype(jnp.float32).reshape(1, f)
    rv2 = running_var.astype(jnp.float32).reshape(1, f)

    grid = (pl.cdiv(f, tf), pl.cdiv(n, tn))        # F parallel, N reduction last
    mask_rows = (n % tn) != 0

    kernel = functools.partial(_class_std_kernel, n_total=n, tn=tn,
                               mask_rows=mask_rows)

    bytes_accessed = (n * f * class_feats.dtype.itemsize  # class_feats read
                      + 2 * f * 4                         # running stats read
                      + 8 * f * 4)                        # packed stats written
    cost = pl.CostEstimate(flops=4 * n * f, transcendentals=0,
                           bytes_accessed=bytes_accessed)

    packed = pl.pallas_call(
        kernel,
        out_shape=jax.ShapeDtypeStruct((8, f), jnp.float32),
        grid=grid,
        in_specs=[
            pl.BlockSpec((tn, tf), lambda j, k: (k, j)),   # class_feats
            pl.BlockSpec((1, tf), lambda j, k: (0, j)),    # running_mean row
            pl.BlockSpec((1, tf), lambda j, k: (0, j)),    # running_var row
        ],
        out_specs=pl.BlockSpec((8, tf), lambda j, k: (0, j)),
        scratch_shapes=[pltpu.VMEM((1, tf), jnp.float32),  # sum accumulator
                        pltpu.VMEM((1, tf), jnp.float32)], # sum-of-squares acc
        compiler_params=pltpu.CompilerParams(
            dimension_semantics=("parallel", "arbitrary")),
        cost_estimate=cost,
    )(class_feats, rm2, rv2)

    batch_mean = packed[0]
    batch_var = packed[1]
    new_rm = packed[2]
    new_rv = packed[3]
    return (batch_mean, batch_var), new_rm, new_rv


if __name__ == "__main__":
    key = jax.random.PRNGKey(0)

    # (num_classes, feat_dim, forced tiles) -- covers: lane-padding path
    # (feat_dim < 128), ragged F + ragged N single-tile path, and a forced
    # multi-tile grid on both axes to exercise the accumulator/masking paths.
    configs = (
        (8, 32, None),
        (10, 384, None),
        (200, 384, (64, 128)),
    )
    for num_classes, feat_dim, forced in configs:
        key, sub = jax.random.split(key)
        class_feats = jax.random.normal(sub, (num_classes, feat_dim),
                                        dtype=jnp.float32)
        # Deterministic init matching nn.Parameter(torch.zeros/ones(feat_dim)).
        running_mean = jnp.zeros((feat_dim,), dtype=jnp.float32)
        running_var = jnp.ones((feat_dim,), dtype=jnp.float32)

        tile_kwargs = {}
        if forced is not None:
            tile_kwargs = dict(tile_n=forced[0], tile_f=forced[1])

        (batch_mean, batch_var), new_rm, new_rv = class_standardization_fwd(
            class_feats, running_mean, running_var, **tile_kwargs)
        jax.block_until_ready((batch_mean, batch_var, new_rm, new_rv))

        # Plain-JAX reference (unbiased variance, torch.var's default).
        ref_mean = jnp.mean(class_feats, axis=0)
        ref_var = jnp.var(class_feats, axis=0, ddof=1)
        assert jnp.allclose(batch_mean, ref_mean, atol=1e-5)
        assert jnp.allclose(batch_var, ref_var, atol=1e-5)
        assert jnp.allclose(new_rm, 0.9 * running_mean + 0.1 * ref_mean, atol=1e-5)
        assert jnp.allclose(new_rv, 0.9 * running_var + 0.1 * ref_var, atol=1e-5)

    print("KERNEL_OK")
</pallas_src>

<mosaic_0001>
module attributes {stable_mosaic.version = 11 : i64} {
  func.func @_class_std_kernel(%arg0: i32, %arg1: i32, %arg2: memref<8x128xf32, #tpu.memory_space<vmem>>, %arg3: memref<1x128xf32, #tpu.memory_space<vmem>>, %arg4: memref<1x128xf32, #tpu.memory_space<vmem>>, %arg5: memref<8x128xf32, #tpu.memory_space<vmem>>, %arg6: memref<1x128xf32, #tpu.memory_space<vmem>>, %arg7: memref<1x128xf32, #tpu.memory_space<vmem>>) attributes {dimension_semantics = [#tpu.dimension_semantics<parallel>, #tpu.dimension_semantics<arbitrary>], iteration_bounds = array<i64: 1, 1>, scalar_prefetch = 0 : i64, scratch_operands = 2 : i64, tpu.core_type = #tpu.core_type<tc>, window_params = [{transform_indices = @transform_0, window_bounds = array<i64: 8, 128>}, {transform_indices = @transform_1, window_bounds = array<i64: 1, 128>}, {transform_indices = @transform_2, window_bounds = array<i64: 1, 128>}, {transform_indices = @transform_3, window_bounds = array<i64: 8, 128>}]} {
    %c0_i32 = arith.constant 0 : i32
    %0 = arith.cmpi eq, %arg1, %c0_i32 : i32
    %1 = arith.extui %0 : i1 to i32
    %c0_i32_0 = arith.constant 0 : i32
    %2 = arith.cmpi ne, %1, %c0_i32_0 : i32
    scf.if %2 {
      %cst_13 = arith.constant 0.000000e+00 : f32
      %18 = vector.broadcast %cst_13 : f32 to vector<1x128xf32>
      %c0_14 = arith.constant 0 : index
      %c0_15 = arith.constant 0 : index
      %19 = vector.load %arg6[%c0_14, %c0_15] : memref<1x128xf32, #tpu.memory_space<vmem>>, vector<1x128xf32>
      tpu.vector_store %arg6[%c0_14, %c0_15], %18 {strides = array<i32>} : memref<1x128xf32, #tpu.memory_space<vmem>>, vector<1x128xf32>,
      %cst_16 = arith.constant 0.000000e+00 : f32
      %20 = vector.broadcast %cst_16 : f32 to vector<1x128xf32>
      %c0_17 = arith.constant 0 : index
      %c0_18 = arith.constant 0 : index
      %21 = vector.load %arg7[%c0_17, %c0_18] : memref<1x128xf32, #tpu.memory_space<vmem>>, vector<1x128xf32>
      tpu.vector_store %arg7[%c0_17, %c0_18], %20 {strides = array<i32>} : memref<1x128xf32, #tpu.memory_space<vmem>>, vector<1x128xf32>,
    } else {
    }
    %c0 = arith.constant 0 : index
    %c0_1 = arith.constant 0 : index
    %3 = vector.load %arg2[%c0, %c0_1] : memref<8x128xf32, #tpu.memory_space<vmem>>, vector<8x128xf32>
    %c0_2 = arith.constant 0 : index
    %c0_3 = arith.constant 0 : index
    %4 = vector.load %arg6[%c0_2, %c0_3] : memref<1x128xf32, #tpu.memory_space<vmem>>, vector<1x128xf32>
    %cst = arith.constant dense<0.000000e+00> : vector<128xf32>
    %5 = vector.multi_reduction <add>, %3, %cst [0] : vector<8x128xf32> to vector<128xf32>
    %6 = vector.shape_cast %5 : vector<128xf32> to vector<1x128xf32>
    %7 = arith.addf %4, %6 : vector<1x128xf32>
    %c0_4 = arith.constant 0 : index
    %c0_5 = arith.constant 0 : index
    %8 = vector.load %arg6[%c0_4, %c0_5] : memref<1x128xf32, #tpu.memory_space<vmem>>, vector<1x128xf32>
    tpu.vector_store %arg6[%c0_4, %c0_5], %7 {strides = array<i32>} : memref<1x128xf32, #tpu.memory_space<vmem>>, vector<1x128xf32>,
    %c0_6 = arith.constant 0 : index
    %c0_7 = arith.constant 0 : index
    %9 = vector.load %arg7[%c0_6, %c0_7] : memref<1x128xf32, #tpu.memory_space<vmem>>, vector<1x128xf32>
    %10 = arith.mulf %3, %3 : vector<8x128xf32>
    %cst_8 = arith.constant dense<0.000000e+00> : vector<128xf32>
    %11 = vector.multi_reduction <add>, %10, %cst_8 [0] : vector<8x128xf32> to vector<128xf32>
    %12 = vector.shape_cast %11 : vector<128xf32> to vector<1x128xf32>
    %13 = arith.addf %9, %12 : vector<1x128xf32>
    %c0_9 = arith.constant 0 : index
    %c0_10 = arith.constant 0 : index
    %14 = vector.load %arg7[%c0_9, %c0_10] : memref<1x128xf32, #tpu.memory_space<vmem>>, vector<1x128xf32>
    tpu.vector_store %arg7[%c0_9, %c0_10], %13 {strides = array<i32>} : memref<1x128xf32, #tpu.memory_space<vmem>>, vector<1x128xf32>,
    %c0_i32_11 = arith.constant 0 : i32
    %15 = arith.cmpi eq, %arg1, %c0_i32_11 : i32
    %16 = arith.extui %15 : i1 to i32
    %c0_i32_12 = arith.constant 0 : i32
    %17 = arith.cmpi ne, %16, %c0_i32_12 : i32
    scf.if %17 {
      %c0_13 = arith.constant 0 : index
      %c0_14 = arith.constant 0 : index
      %18 = vector.load %arg6[%c0_13, %c0_14] : memref<1x128xf32, #tpu.memory_space<vmem>>, vector<1x128xf32>
      %cst_15 = arith.constant 1.250000e-01 : f32
      %19 = vector.broadcast %cst_15 : f32 to vector<1x128xf32>
      %20 = arith.mulf %18, %19 : vector<1x128xf32>
      %c0_16 = arith.constant 0 : index
      %c0_17 = arith.constant 0 : index
      %21 = vector.load %arg7[%c0_16, %c0_17] : memref<1x128xf32, #tpu.memory_space<vmem>>, vector<1x128xf32>
      %cst_18 = arith.constant 8.000000e+00 : f32
      %22 = vector.broadcast %cst_18 : f32 to vector<1x128xf32>
      %23 = arith.mulf %22, %20 : vector<1x128xf32>
      %24 = arith.mulf %23, %20 : vector<1x128xf32>
      %25 = arith.subf %21, %24 : vector<1x128xf32>
      %cst_19 = arith.constant 0.142857149 : f32
      %26 = vector.broadcast %cst_19 : f32 to vector<1x128xf32>
      %27 = arith.mulf %25, %26 : vector<1x128xf32>
      %c0_20 = arith.constant 0 : index
      %c0_21 = arith.constant 0 : index
      %28 = vector.load %arg3[%c0_20, %c0_21] : memref<1x128xf32, #tpu.memory_space<vmem>>, vector<1x128xf32>
      %cst_22 = arith.constant 0.899999976 : f32
      %29 = vector.broadcast %cst_22 : f32 to vector<1x128xf32>
      %30 = arith.mulf %29, %28 : vector<1x128xf32>
      %cst_23 = arith.constant 1.000000e-01 : f32
      %31 = vector.broadcast %cst_23 : f32 to vector<1x128xf32>
      %32 = arith.mulf %31, %20 : vector<1x128xf32>
      %33 = arith.addf %30, %32 : vector<1x128xf32>
      %c0_24 = arith.constant 0 : index
      %c0_25 = arith.constant 0 : index
      %34 = vector.load %arg4[%c0_24, %c0_25] : memref<1x128xf32, #tpu.memory_space<vmem>>, vector<1x128xf32>
      %cst_26 = arith.constant 0.899999976 : f32
      %35 = vector.broadcast %cst_26 : f32 to vector<1x128xf32>
      %36 = arith.mulf %35, %34 : vector<1x128xf32>
      %cst_27 = arith.constant 1.000000e-01 : f32
      %37 = vector.broadcast %cst_27 : f32 to vector<1x128xf32>
      %38 = arith.mulf %37, %27 : vector<1x128xf32>
      %39 = arith.addf %36, %38 : vector<1x128xf32>
      %c0_28 = arith.constant 0 : index
      %c0_29 = arith.constant 0 : index
      %40 = vector.load %arg5[%c0_28, %c0_29] : memref<8x128xf32, #tpu.memory_space<vmem>>, vector<1x128xf32>
      tpu.vector_store %arg5[%c0_28, %c0_29], %20 {strides = array<i32>} : memref<8x128xf32, #tpu.memory_space<vmem>>, vector<1x128xf32>,
      %c1 = arith.constant 1 : index
      %c0_30 = arith.constant 0 : index
      %41 = vector.load %arg5[%c1, %c0_30] : memref<8x128xf32, #tpu.memory_space<vmem>>, vector<1x128xf32>
      tpu.vector_store %arg5[%c1, %c0_30], %27 {strides = array<i32>} : memref<8x128xf32, #tpu.memory_space<vmem>>, vector<1x128xf32>,
      %c2 = arith.constant 2 : index
      %c0_31 = arith.constant 0 : index
      %42 = vector.load %arg5[%c2, %c0_31] : memref<8x128xf32, #tpu.memory_space<vmem>>, vector<1x128xf32>
      tpu.vector_store %arg5[%c2, %c0_31], %33 {strides = array<i32>} : memref<8x128xf32, #tpu.memory_space<vmem>>, vector<1x128xf32>,
      %c3 = arith.constant 3 : index
      %c0_32 = arith.constant 0 : index
      %43 = vector.load %arg5[%c3, %c0_32] : memref<8x128xf32, #tpu.memory_space<vmem>>, vector<1x128xf32>
      tpu.vector_store %arg5[%c3, %c0_32], %39 {strides = array<i32>} : memref<8x128xf32, #tpu.memory_space<vmem>>, vector<1x128xf32>,
      %cst_33 = arith.constant 0.000000e+00 : f32
      %44 = vector.broadcast %cst_33 : f32 to vector<4x128xf32>
      %c4 = arith.constant 4 : index
      %c0_34 = arith.constant 0 : index
      %45 = vector.load %arg5[%c4, %c0_34] : memref<8x128xf32, #tpu.memory_space<vmem>>, vector<4x128xf32>
      tpu.vector_store %arg5[%c4, %c0_34], %44 {strides = array<i32>} : memref<8x128xf32, #tpu.memory_space<vmem>>, vector<4x128xf32>,
    } else {
    }
    return
  }
  func.func @transform_0(%arg0: i32, %arg1: i32) -> (i32, i32) {
    %c0_i32 = arith.constant 0 : i32
    return %arg1, %arg0 : i32, i32
  }
  func.func @transform_1(%arg0: i32, %arg1: i32) -> (i32, i32) {
    %c0_i32 = arith.constant 0 : i32
    %c0_i32_0 = arith.constant 0 : i32
    return %c0_i32, %arg0 : i32, i32
  }
  func.func @transform_2(%arg0: i32, %arg1: i32) -> (i32, i32) {
    %c0_i32 = arith.constant 0 : i32
    %c0_i32_0 = arith.constant 0 : i32
    return %c0_i32, %arg0 : i32, i32
  }
  func.func @transform_3(%arg0: i32, %arg1: i32) -> (i32, i32) {
    %c0_i32 = arith.constant 0 : i32
    %c0_i32_0 = arith.constant 0 : i32
    return %c0_i32, %arg0 : i32, i32
  }
}

</mosaic_0001>

<bundles_post_ra>
// kernel: tpu_custom_call.1
= control target key start
LH: loop header
LB: loop body
LE: loop exit
PB: predicated region body
PF: predicated region fallthrough
CT: control target
= control target key end

     0   :  { %8 = vsyncpa [#allocation5], 0  ;;  %s195_s0 = inlined_call_operand.hbm [shape: f32[8,32], index: 0, kind: input, shape index: {}]   ;;  %s196_s1 = inlined_call_operand.vmem [shape: f32[1,32], index: 1, kind: input, shape index: {}]   ;;  %s197_s2 = inlined_call_operand.vmem [shape: f32[1,32], index: 2, kind: input, shape index: {}]   ;;  %s198_s3 = inlined_call_operand.hbm [shape: f32[8,32], index: 3, kind: output, shape index: {}]  }
   0x1   :  { %9 = vsyncpa [#allocation6], 0  ;;  %s142_s12 = smov [#allocation4]   ;;  %s94_s16 = scalar_lea.hbm %s195_s0, 128 }
   0x2   :  { %s16_s13 = sshll.u32 %s142_s12, 4  ;;  %p95_p0 = scmp.ne.s32.totalorder %s195_s0, %s94_s16  ;;  %s17_s13 = int_to_ptr.vmem [resolvable:$true] %s16_s13 }
   0x3   :  { %p98_p1 = scmp.lt.u32.totalorder %s94_s16, %s195_s0 }
   0x5   :  { %p100_p2 = pnand %p98_p1, %p95_p0 }
   0x7   :  { %103 = shalt.err (!%p100_p2)
}
   0x8   :  { %s104_s21 = scalar_lea.vmem %s17_s13, 128  ;;  %p109_p4 = scmp.lt.s32.totalorder %s17_s13, %s17_s13 }
   0x9   :  { %p105_p3 = scmp.ne.s32.totalorder %s17_s13, %s104_s21  ;;  %p110_p5 = scmp.lt.s32.totalorder %s104_s21, %s104_s21 }
   0xb   :  { %p111_p6 = por %p110_p5, %p109_p4 }
   0xd   :  { %p112_p7 = pnand %p111_p6, %p105_p3 }
   0xf   :  { %115 = shalt.err (!%p112_p7)
}
  0x10   :  { %19 = dma.hbm_to_vmem [thread:$0]  %s195_s0, 128, %s17_s13, [#allocation5]  }
  0x11   :  { %138 = dma.done.wait [#allocation5], 128  }
  0x12   :  { %139 = vsyncadd [#allocation5], 4294967168  ;;  %v143_v0 = vmov 0.0   ;;  %v33_v1 = vld [vmem:[#allocation4] sm:$0xff]  ;;  %v63_v19 = vld [vmem:[%s196_s1] sm:$0x1] }
  0x13   :  { %31 = vst [vmem:[#allocation2] sm:$0x1] %v143_v0  ;;  %32 = vst [vmem:[#allocation3] sm:$0x1] %v143_v0  ;;  %v35_v2 = vrot.slane %v33_v1, 4  ;;  %v44_v3 = vmul.f32 %v33_v1, %v33_v1  ;;  %s144_s27 = smov [#allocation7]  }
  0x14   :  { %75 = vst [vmem:[#allocation7 + $0x4] sm:$0xf] %v143_v0  ;;  %v64_v22 = vmul.f32 0.9, %v63_v19  ;;  %v67_v28 = vld [vmem:[%s197_s2] sm:$0x1] }
  0x15   :  { %v36_v4 = vadd.f32 %v35_v2, %v33_v1  ;;  %v45_v5 = vrot.slane %v44_v3, 4  ;;  %v68_v31 = vmul.f32 0.9, %v67_v28  ;;  %s82_s28 = sshll.u32 %s144_s27, 4  ;;  %s83_s28 = int_to_ptr.vmem [resolvable:$true] %s82_s28 }
  0x16   :  { %s116_s1 = scalar_lea.vmem %s83_s28, 128  ;;  %p121_p9 = scmp.lt.s32.totalorder %s83_s28, %s83_s28 }
  0x17   :  { %v37_v6 = vrot.slane %v36_v4, 2  ;;  %v46_v7 = vadd.f32 %v45_v5, %v44_v3  ;;  %p117_p8 = scmp.ne.s32.totalorder %s83_s28, %s116_s1  ;;  %p122_p10 = scmp.lt.s32.totalorder %s116_s1, %s116_s1 }
  0x19   :  { %v38_v8 = vadd.f32 %v37_v6, %v36_v4  ;;  %v47_v9 = vrot.slane %v46_v7, 2  ;;  %p123_p11 = por %p122_p10, %p121_p9 }
  0x1a   :  { %v34_v12 = vld [vmem:[#allocation2] sm:$0x1]  ;;  %v43_v15 = vld [vmem:[#allocation3] sm:$0x1] }
  0x1b   :  { %v39_v10 = vrot.slane %v38_v8, 1  ;;  %v48_v11 = vadd.f32 %v47_v9, %v46_v7  ;;  %p124_p12 = pnand %p123_p11, %p117_p8 }
  0x1d   :  { %v40_v13 = vadd.f32 %v39_v10, %v38_v8  ;;  %v49_v14 = vrot.slane %v48_v11, 1 }
  0x1f   :  { %v41_v16 = vadd.f32 %v40_v13, %v34_v12  ;;  %v50_v17 = vadd.f32 %v49_v14, %v48_v11 }
  0x21   :  { %42 = vst [vmem:[#allocation2] sm:$0x1] %v41_v16  ;;  %v51_v18 = vadd.f32 %v50_v17, %v43_v15 }
  0x23   :  { %52 = vst [vmem:[#allocation3] sm:$0x1] %v51_v18 }
  0x28   :  { %v56_v20 = vld [vmem:[#allocation2] sm:$0x1] }
  0x29   :  { %v57_v21 = vmul.f32 0.125, %v56_v20 }
  0x2a   :  { %v58_v25 = vld [vmem:[#allocation3] sm:$0x1] }
  0x2b   :  { %71 = vst [vmem:[#allocation7] sm:$0x1] %v57_v21  ;;  %v65_v23 = vmul.f32 0.1, %v57_v21  ;;  %v59_v24 = vmul.f32 8.0, %v57_v21 }
  0x2d   :  { %v66_v26 = vadd.f32 %v65_v23, %v64_v22  ;;  %v60_v27 = vmul.f32 %v59_v24, %v57_v21 }
  0x2f   :  { %73 = vst [vmem:[#allocation7 + $0x2] sm:$0x1] %v66_v26  ;;  %v61_v29 = vsub.f32 %v58_v25, %v60_v27 }
  0x31   :  { %v62_v30 = vmul.f32 0.14285715, %v61_v29 }
  0x33   :  { %72 = vst [vmem:[#allocation7 + $0x1] sm:$0x1] %v62_v30  ;;  %v69_v32 = vmul.f32 0.1, %v62_v30 }
  0x35   :  { %v70_v33 = vadd.f32 %v69_v32, %v68_v31 }
  0x37   :  { %74 = vst [vmem:[#allocation7 + $0x3] sm:$0x1] %v70_v33 }
  0x38   :  { %127 = shalt.err (!%p124_p12)
}
  0x39   :  { %s128_s30 = scalar_lea.hbm %s198_s3, 128 }
  0x3a   :  { %p129_p13 = scmp.ne.s32.totalorder %s198_s3, %s128_s30  ;;  %p132_p0 = scmp.lt.u32.totalorder %s128_s30, %s198_s3 }
  0x3c   :  { %p134_p1 = pnand %p132_p0, %p129_p13 }
  0x3e   :  { %137 = shalt.err (!%p134_p1)
}
  0x3f   :  { %85 = dma.vmem_to_hbm [thread:$0]  %s83_s28, 128, %s198_s3, [#allocation6]  }
  0x40   :  { %140 = dma.done.wait [#allocation6], 128  }
  0x41   :  { %141 = vsyncadd [#allocation6], 4294967168 }
  0x42   :  { %89 = vsyncpa [#allocation5], 1 }
  0x43   :  { %90 = vsyncpa [#allocation6], 1 }

</bundles_post_ra>
